<compile_context>
chip_gen: v7x
topology: tpu7x:2x2x1
jax: 0.10.0
libtpu: 0.0.40
codegen_flags: <defaults>
</compile_context>

<pallas_src>
import math
import functools

import numpy as np
import jax
import jax.numpy as jnp
from jax.experimental import pallas as pl
from jax.experimental.pallas import tpu as pltpu


# Per-tile budget: ~2 MiB of f32 per buffer keeps the kernel in the
# ~85%-of-HBM-roofline regime for tiled elementwise ops while the
# double-buffered in/out streams + pe stay far below every generation's
# scoped-VMEM default (v7x is the tightest at 32 MiB).
_TILE_ELEMS = 512 * 1024        # total f32 elements per (tr, tc) tile (2 MiB)
_LANE_TILE_MAX = 64 * 1024      # cap on the lane-axis tile (multiple of 128)


def _build_pe(max_seq_len: int, d_model: int) -> np.ndarray:
    """Vectorized, exact reproduction of the PyTorch __init__ PE table
    (including its unusual cos exponent 2*(i+1)/d_model)."""
    assert d_model % 2 == 0, "d_model must be even (PyTorch loop writes pe[:, i+1])"
    pos = np.arange(max_seq_len, dtype=np.float64)[:, None]
    i = np.arange(0, d_model, 2, dtype=np.float64)[None, :]
    pe = np.zeros((max_seq_len, d_model), dtype=np.float64)
    pe[:, 0::2] = np.sin(pos / 10000.0 ** (2.0 * i / d_model))
    pe[:, 1::2] = np.cos(pos / 10000.0 ** (2.0 * (i + 1.0) / d_model))
    return pe.astype(np.float32)


def _pos_enc_kernel(x_ref, pe_ref, o_ref, *, scale):
    # Pure VPU hot path: compile-time scale + sublane-broadcast add on
    # lane-dense (tr, tc) tiles -> unmasked vector stores.
    o_ref[...] = x_ref[...] * scale + pe_ref[...]


def positional_encoder(x: jax.Array, pe_full: jax.Array, d_model: int) -> jax.Array:
    """x: (B, S, D) float32; pe_full: (max_seq_len, D) float32."""
    B, S, D = x.shape
    assert D == d_model

    scale = math.sqrt(d_model)

    # Lane-dense 2-D view: rows = batch, cols = flattened (S, D) slab.
    # pe broadcasts along the row axis, so pe[:S] flattens to a single row.
    C = S * D
    x2 = x.reshape(B, C)
    pe2 = pe_full[:S, :].reshape(1, C)          # pe[:, :seq_len], flattened

    # --- tile selection (derived from the VMEM/roofline budget, not the shape) ---
    if C % 128 == 0:
        tc = min(C, _LANE_TILE_MAX)             # lane-dense multiple of 128
    else:
        tc = C                                  # full-dim block is always legal
    row_budget = max(_TILE_ELEMS // tc, 8)
    if B >= 8:
        tr = max(min((row_budget // 8) * 8, (B // 8) * 8), 8)
    else:
        tr = B                                  # full-dim block for tiny batch
    n_col = pl.cdiv(C, tc)
    n_row = pl.cdiv(B, tr)

    kernel = functools.partial(_pos_enc_kernel, scale=scale)

    out = pl.pallas_call(
        kernel,
        out_shape=jax.ShapeDtypeStruct((B, C), x.dtype),
        grid_spec=pltpu.PrefetchScalarGridSpec(
            num_scalar_prefetch=0,
            # Rows are the innermost grid axis: the pe block index depends only
            # on the outer column axis, so each pe tile is fetched once and
            # stays resident in VMEM while all row tiles stream through.
            grid=(n_col, n_row),
            in_specs=[
                pl.BlockSpec((tr, tc), lambda c, r: (r, c)),   # x tile
                pl.BlockSpec((1, tc), lambda c, r: (0, c)),    # pe tile (resident)
            ],
            out_specs=pl.BlockSpec((tr, tc), lambda c, r: (r, c)),
        ),
        compiler_params=pltpu.CompilerParams(
            # Both axes are independent -> shard freely across v7x's two
            # TensorCores; larger shapes give many grid steps per core.
            dimension_semantics=("parallel", "parallel"),
        ),
    )(x2, pe2)

    return out.reshape(B, S, D)


if __name__ == "__main__":
    # Small, forward-consistent shapes: batch=2, seq=8, d_model=32, max_seq_len=80.
    B, S, D, MAX_SEQ = 2, 8, 32, 80

    pe_full = jnp.asarray(_build_pe(MAX_SEQ, D))

    key = jax.random.PRNGKey(0)
    x = jax.random.normal(key, (B, S, D), dtype=jnp.float32)

    out = positional_encoder(x, pe_full, d_model=D)
    out = jax.block_until_ready(out)

    # Reference check in plain JAX.
    ref = x * math.sqrt(D) + pe_full[None, :S, :]
    np.testing.assert_allclose(np.asarray(out), np.asarray(ref), rtol=1e-6, atol=1e-6)

    print("KERNEL_OK")
</pallas_src>

<mosaic_0001>
module attributes {stable_mosaic.version = 11 : i64} {
  func.func @_pos_enc_kernel(%arg0: i32, %arg1: i32, %arg2: memref<2x256xf32, #tpu.memory_space<vmem>>, %arg3: memref<1x256xf32, #tpu.memory_space<vmem>>, %arg4: memref<2x256xf32, #tpu.memory_space<vmem>>) attributes {dimension_semantics = [#tpu.dimension_semantics<parallel>, #tpu.dimension_semantics<parallel>], iteration_bounds = array<i64: 1, 1>, scalar_prefetch = 0 : i64, scratch_operands = 0 : i64, tpu.core_type = #tpu.core_type<tc>, window_params = [{transform_indices = @transform_0, window_bounds = array<i64: 2, 256>}, {transform_indices = @transform_1, window_bounds = array<i64: 1, 256>}, {transform_indices = @transform_2, window_bounds = array<i64: 2, 256>}]} {
    %c0 = arith.constant 0 : index
    %c0_0 = arith.constant 0 : index
    %0 = vector.load %arg2[%c0, %c0_0] : memref<2x256xf32, #tpu.memory_space<vmem>>, vector<2x256xf32>
    %cst = arith.constant 5.65685415 : f32
    %1 = vector.broadcast %cst : f32 to vector<2x256xf32>
    %2 = arith.mulf %0, %1 : vector<2x256xf32>
    %c0_1 = arith.constant 0 : index
    %c0_2 = arith.constant 0 : index
    %3 = vector.load %arg3[%c0_1, %c0_2] : memref<1x256xf32, #tpu.memory_space<vmem>>, vector<1x256xf32>
    %4 = vector.broadcast %3 : vector<1x256xf32> to vector<2x256xf32>
    %5 = arith.addf %2, %4 : vector<2x256xf32>
    %c0_3 = arith.constant 0 : index
    %c0_4 = arith.constant 0 : index
    %6 = vector.load %arg4[%c0_3, %c0_4] : memref<2x256xf32, #tpu.memory_space<vmem>>, vector<2x256xf32>
    tpu.vector_store %arg4[%c0_3, %c0_4], %5 {strides = array<i32>} : memref<2x256xf32, #tpu.memory_space<vmem>>, vector<2x256xf32>,
    return
  }
  func.func @transform_0(%arg0: i32, %arg1: i32) -> (i32, i32) {
    %c0_i32 = arith.constant 0 : i32
    return %arg1, %arg0 : i32, i32
  }
  func.func @transform_1(%arg0: i32, %arg1: i32) -> (i32, i32) {
    %c0_i32 = arith.constant 0 : i32
    %c0_i32_0 = arith.constant 0 : i32
    return %c0_i32, %arg0 : i32, i32
  }
  func.func @transform_2(%arg0: i32, %arg1: i32) -> (i32, i32) {
    %c0_i32 = arith.constant 0 : i32
    return %arg1, %arg0 : i32, i32
  }
}

</mosaic_0001>

<bundles_post_ra>
// kernel: tpu_custom_call.1
= control target key start
LH: loop header
LB: loop body
LE: loop exit
PB: predicated region body
PF: predicated region fallthrough
CT: control target
= control target key end

     0   :  { %7 = vsyncpa [#allocation3], 0  ;;  %s158_s0 = inlined_call_operand.hbm [shape: f32[2,256], index: 0, kind: input, shape index: {}]   ;;  %s159_s1 = inlined_call_operand.vmem [shape: f32[1,256], index: 1, kind: input, shape index: {}]   ;;  %s160_s2 = inlined_call_operand.hbm [shape: f32[2,256], index: 2, kind: output, shape index: {}]  }
   0x1   :  { %8 = vsyncpa [#allocation4], 0  ;;  %s113_s9 = smov [#allocation2]   ;;  %s65_s13 = scalar_lea.hbm %s158_s0, 64 }
   0x2   :  { %s15_s10 = sshll.u32 %s113_s9, 4  ;;  %p66_p0 = scmp.ne.s32.totalorder %s158_s0, %s65_s13  ;;  %s16_s10 = int_to_ptr.vmem [resolvable:$true] %s15_s10 }
   0x3   :  { %p69_p1 = scmp.lt.u32.totalorder %s65_s13, %s158_s0 }
   0x5   :  { %p71_p2 = pnand %p69_p1, %p66_p0 }
   0x7   :  { %74 = shalt.err (!%p71_p2)
}
   0x8   :  { %s75_s18 = scalar_lea.vmem %s16_s10, 64  ;;  %p80_p4 = scmp.lt.s32.totalorder %s16_s10, %s16_s10 }
   0x9   :  { %p76_p3 = scmp.ne.s32.totalorder %s16_s10, %s75_s18  ;;  %p81_p5 = scmp.lt.s32.totalorder %s75_s18, %s75_s18 }
   0xb   :  { %p82_p6 = por %p81_p5, %p80_p4 }
   0xd   :  { %p83_p7 = pnand %p82_p6, %p76_p3 }
   0xf   :  { %86 = shalt.err (!%p83_p7)
}
  0x10   :  { %18 = dma.hbm_to_vmem [thread:$0]  %s158_s0, 64, %s16_s10, [#allocation3]  }
  0x11   :  { %109 = dma.done.wait [#allocation3], 64  }
  0x12   :  { %110 = vsyncadd [#allocation3], 4294967232  ;;  %v28_v0 = vlaneseq  ;;  %v114_v1 = vmov 1983009808   ;;  %v24_v7 = vld [vmem:[#allocation2] sm:$0xf] }
  0x13   :  { %v38_v2 = vunpack.c.l.s4 %v114_v1  ;;  %v26_v8 = vld [vmem:[%s159_s1] sm:$0x3]  ;;  %v25_v12 = vmul.f32 5.656854, %v24_v7  ;;  %s115_s0 = smov [#allocation5]  }
  0x14   :  { %v29_v3 = vshrl.u32 %v28_v0, 7  ;;  %s53_s23 = sshll.u32 %s115_s0, 4  ;;  %s54_s23 = int_to_ptr.vmem [resolvable:$true] %s53_s23 }
  0x15   :  { %v39_v6 = vunpack.c.0.s8 %v38_v2  ;;  %s87_s24 = scalar_lea.vmem %s54_s23, 64  ;;  %p92_p9 = scmp.lt.s32.totalorder %s54_s23, %s54_s23 }
  0x16   :  { %v30_v4 = vsub.s32 0, %v29_v3  ;;  %v34_v5 = vsub.s32 1, %v29_v3  ;;  %p88_p8 = scmp.ne.s32.totalorder %s54_s23, %s87_s24  ;;  %p93_p10 = scmp.lt.s32.totalorder %s87_s24, %s87_s24 }
  0x17   :  { %v42_v11 = vsub.s32 %v39_v6, %v29_v3 }
  0x18   :  { %v31_v9 = vrot.slane %v26_v8, %v30_v4  ;;  %v35_v10 = vrot.slane %v26_v8, %v34_v5  ;;  %p94_p11 = por %p93_p10, %p92_p9 }
  0x1a   :  { %v36_v13 = vcombine.low %v31_v9, %v35_v10  ;;  %p95_p12 = pnand %p94_p11, %p88_p8 }
  0x1c   :  { %v43_v14 = vrot.slane %v36_v13, %v42_v11 }
  0x1e   :  { %v45_v15 = vadd.f32 %v43_v14, %v25_v12 }
  0x20   :  { %46 = vst [vmem:[#allocation5] sm:$0xf] %v45_v15 }
  0x21   :  { %98 = shalt.err (!%p95_p12)
}
  0x22   :  { %s99_s26 = scalar_lea.hbm %s160_s2, 64 }
  0x23   :  { %p100_p13 = scmp.ne.s32.totalorder %s160_s2, %s99_s26  ;;  %p103_p0 = scmp.lt.u32.totalorder %s99_s26, %s160_s2 }
  0x25   :  { %p105_p1 = pnand %p103_p0, %p100_p13 }
  0x27   :  { %108 = shalt.err (!%p105_p1)
}
  0x28   :  { %56 = dma.vmem_to_hbm [thread:$0]  %s54_s23, 64, %s160_s2, [#allocation4]  }
  0x29   :  { %111 = dma.done.wait [#allocation4], 64  }
  0x2a   :  { %112 = vsyncadd [#allocation4], 4294967232 }
  0x2b   :  { %60 = vsyncpa [#allocation3], 1 }
  0x2c   :  { %61 = vsyncpa [#allocation4], 1 }

</bundles_post_ra>
